<compile_context>
chip_gen: v5e
topology: v5e:2x2
jax: 0.10.0
libtpu: 0.0.40
codegen_flags: <defaults>
</compile_context>

<pallas_src>
import jax
import jax.numpy as jnp
from jax.experimental import pallas as pl
from jax.experimental.pallas import tpu as pltpu


def _bn_kernel(x_ref, scale_ref, shift_ref, o_ref):
    # x_ref: (TR, TL) tile; scale/shift broadcast from (TR, 1) or (1, TL).
    x = x_ref[...].astype(jnp.float32)
    o_ref[...] = (x * scale_ref[...] + shift_ref[...]).astype(o_ref.dtype)


def _sublane_multiple(dtype):
    # f32 -> 8, bf16/f16 -> 16, int8/fp8 -> 32 (sub-32-bit dtypes pack sublanes).
    itemsize = jnp.dtype(dtype).itemsize
    return max(8, 32 // max(1, itemsize))


def _device_params():
    """Return (target input-block bytes, #TensorCores sharing the grid)."""
    target_bytes = 4 << 20
    n_tc = 1
    try:
        kind = jax.devices()[0].device_kind.lower()
        if "v7" in kind:  # v7x: 2 TensorCores per chip share the grid
            n_tc = 2
    except Exception:     # detection is best-effort only
        pass
    return target_bytes, n_tc


def _choose_tiles(num_rows, row_len, itemsize, sub, target_bytes):
    """Pick (TR, TL) so one input block is ~target_bytes and layout-legal."""
    # Lane tile: splitting the lane axis is only legal in 128-multiples (or the
    # full dim), so for non-128-multiple rows we take the whole row.
    if row_len % 128 == 0 and row_len > 128:
        tl_cap = max(128, ((target_bytes // itemsize) // 128) * 128)
        tl = min(row_len, tl_cap)
    else:
        tl = row_len

    # Row tile: fill the remaining byte budget with whole sublane groups.
    rows = max(1, target_bytes // max(1, tl * itemsize))
    if rows >= num_rows:
        tr = num_rows                       # full dim is always legal
    else:
        tr = max(sub, (rows // sub) * sub)  # dtype-aware sublane multiple
        tr = min(tr, num_rows)              # if capped: equals num_rows (legal)
    return tr, tl


def eval_batchnorm(x, running_mean, running_var, weight, bias, eps=1e-05):
    """Eval-mode batchnorm on NCHW input using a Pallas TPU kernel."""
    N, C, H, W = x.shape
    assert running_mean.shape == (C,)
    assert running_var.shape == (C,)
    assert weight.shape == (C,)
    assert bias.shape == (C,)

    f32 = jnp.float32
    # Fold everything per-channel into scale/shift (computed in f32).
    scale_c = weight.astype(f32) * jax.lax.rsqrt(running_var.astype(f32) + f32(eps))
    shift_c = bias.astype(f32) - running_mean.astype(f32) * scale_c

    HW = H * W
    itemsize = jnp.dtype(x.dtype).itemsize
    out_itemsize = itemsize
    sub = _sublane_multiple(x.dtype)
    target_bytes, n_tc = _device_params()

    lane_aligned = (HW % 128 == 0) and (HW >= 128)

    if lane_aligned:
        # Lanes already dense; per-row scale/shift columns (no per-lane traffic).
        num_rows, row_len = N * C, HW
        x2 = x.reshape(num_rows, row_len)
        scale = jnp.tile(scale_c, N).reshape(num_rows, 1)
        shift = jnp.tile(shift_c, N).reshape(num_rows, 1)
    else:
        # Small / misaligned spatial dims: flatten channels into the lane axis
        # for lane-dense loads/stores; per-lane scale/shift rows.
        num_rows, row_len = N, C * HW
        x2 = x.reshape(num_rows, row_len)
        scale = jnp.repeat(scale_c, HW).reshape(1, row_len)
        shift = jnp.repeat(shift_c, HW).reshape(1, row_len)

    TR, TL = _choose_tiles(num_rows, row_len, itemsize, sub, target_bytes)

    # v7x only: if the whole problem fits in one block, split the lane axis
    # (cheap) or the row axis so both TensorCores get a block.  Never shrink
    # blocks just to manufacture grid steps on single-TC v5e/v6e.
    if n_tc >= 2 and pl.cdiv(num_rows, TR) * pl.cdiv(row_len, TL) == 1:
        if row_len % 128 == 0 and TL >= 256:
            TL = max(128, ((TL // 2) // 128) * 128)
        elif TR >= 2 * sub:
            TR = max(sub, ((TR // 2) // sub) * sub)

    grid = (pl.cdiv(num_rows, TR), pl.cdiv(row_len, TL))

    if lane_aligned:
        param_spec = pl.BlockSpec((TR, 1), lambda i, j: (i, 0))
        param_block_bytes = TR * 4
    else:
        param_spec = pl.BlockSpec((1, TL), lambda i, j: (0, j))
        param_block_bytes = TL * 4

    # Explicit VMEM budget: double-buffered input + output + both param blocks,
    # plus headroom.  Keeps ~4 MiB blocks legal under v5e's 16 MiB scoped
    # default and well under v7x's 64 MiB physical VMEM.
    footprint = 2 * (TR * TL * (itemsize + out_itemsize) + 2 * param_block_bytes)
    vmem_limit = int(min(56 << 20, max(32 << 20, footprint + (4 << 20))))

    out2 = pl.pallas_call(
        _bn_kernel,
        out_shape=jax.ShapeDtypeStruct((num_rows, row_len), x.dtype),
        grid_spec=pl.GridSpec(
            grid=grid,
            in_specs=[
                pl.BlockSpec((TR, TL), lambda i, j: (i, j)),  # x tile
                param_spec,                                   # scale
                param_spec,                                   # shift
            ],
            out_specs=pl.BlockSpec((TR, TL), lambda i, j: (i, j)),
        ),
        compiler_params=pltpu.CompilerParams(
            dimension_semantics=("parallel", "parallel"),
            vmem_limit_bytes=vmem_limit,
        ),
    )(x2, scale, shift)

    return out2.reshape(N, C, H, W)


def _reference(x, running_mean, running_var, weight, bias, eps):
    N, C, H, W = x.shape
    return (
        weight.reshape(1, C, 1, 1)
        * (x - running_mean.reshape(1, C, 1, 1))
        / jnp.sqrt(eps + running_var.reshape(1, C, 1, 1))
        + bias.reshape(1, C, 1, 1)
    )


if __name__ == "__main__":
    eps = 1e-05
    key = jax.random.PRNGKey(0)

    def make_case(case_key, N, C, H, W):
        kx, km, kv, kw, kb = jax.random.split(case_key, 5)
        x = jax.random.normal(kx, (N, C, H, W), dtype=jnp.float32)
        running_mean = 0.1 * jax.random.normal(km, (C,), dtype=jnp.float32)
        running_var = 1.0 + 0.1 * jnp.abs(
            jax.random.normal(kv, (C,), dtype=jnp.float32)
        )
        weight = 1.0 + 0.1 * jax.random.normal(kw, (C,), dtype=jnp.float32)
        bias = 0.1 * jax.random.normal(kb, (C,), dtype=jnp.float32)
        return x, running_mean, running_var, weight, bias

    cases = [
        (2, 4, 16, 16),   # lane-aligned path (H*W = 256, multiple of 128)
        (3, 5, 16, 16),   # lane-aligned path, N*C = 15 (partial row blocks)
        (2, 8, 7, 7),     # lane-dense path (H*W = 49, not a 128-multiple)
    ]
    keys = jax.random.split(key, len(cases))
    for k, (N, C, H, W) in zip(keys, cases):
        x, rm, rv, w, b = make_case(k, N, C, H, W)
        out = jax.block_until_ready(eval_batchnorm(x, rm, rv, w, b, eps))
        ref = _reference(x, rm, rv, w, b, eps)
        assert out.shape == x.shape
        assert jnp.allclose(out, ref, atol=1e-5, rtol=1e-5), (N, C, H, W)

    print("KERNEL_OK")
</pallas_src>

<mosaic_0001>
module attributes {stable_mosaic.version = 11 : i64} {
  func.func @_bn_kernel(%arg0: i32, %arg1: i32, %arg2: memref<8x256xf32, #tpu.memory_space<vmem>>, %arg3: memref<8x1xf32, #tpu.memory_space<vmem>>, %arg4: memref<8x1xf32, #tpu.memory_space<vmem>>, %arg5: memref<8x256xf32, #tpu.memory_space<vmem>>) attributes {dimension_semantics = [#tpu.dimension_semantics<parallel>, #tpu.dimension_semantics<parallel>], iteration_bounds = array<i64: 1, 1>, scalar_prefetch = 0 : i64, scratch_operands = 0 : i64, tpu.core_type = #tpu.core_type<tc>, window_params = [{transform_indices = @transform_0, window_bounds = array<i64: 8, 256>}, {transform_indices = @transform_1, window_bounds = array<i64: 8, 1>}, {transform_indices = @transform_2, window_bounds = array<i64: 8, 1>}, {transform_indices = @transform_3, window_bounds = array<i64: 8, 256>}]} {
    %c0 = arith.constant 0 : index
    %c0_0 = arith.constant 0 : index
    %0 = vector.load %arg2[%c0, %c0_0] : memref<8x256xf32, #tpu.memory_space<vmem>>, vector<8x256xf32>
    %c0_1 = arith.constant 0 : index
    %c0_2 = arith.constant 0 : index
    %1 = vector.load %arg3[%c0_1, %c0_2] : memref<8x1xf32, #tpu.memory_space<vmem>>, vector<8x1xf32>
    %2 = vector.broadcast %1 : vector<8x1xf32> to vector<8x256xf32>
    %3 = arith.mulf %0, %2 : vector<8x256xf32>
    %c0_3 = arith.constant 0 : index
    %c0_4 = arith.constant 0 : index
    %4 = vector.load %arg4[%c0_3, %c0_4] : memref<8x1xf32, #tpu.memory_space<vmem>>, vector<8x1xf32>
    %5 = vector.broadcast %4 : vector<8x1xf32> to vector<8x256xf32>
    %6 = arith.addf %3, %5 : vector<8x256xf32>
    %c0_5 = arith.constant 0 : index
    %c0_6 = arith.constant 0 : index
    %7 = vector.load %arg5[%c0_5, %c0_6] : memref<8x256xf32, #tpu.memory_space<vmem>>, vector<8x256xf32>
    tpu.vector_store %arg5[%c0_5, %c0_6], %6 {strides = array<i32>} : memref<8x256xf32, #tpu.memory_space<vmem>>, vector<8x256xf32>,
    return
  }
  func.func @transform_0(%arg0: i32, %arg1: i32) -> (i32, i32) {
    %c0_i32 = arith.constant 0 : i32
    return %arg0, %arg1 : i32, i32
  }
  func.func @transform_1(%arg0: i32, %arg1: i32) -> (i32, i32) {
    %c0_i32 = arith.constant 0 : i32
    %c0_i32_0 = arith.constant 0 : i32
    return %arg0, %c0_i32 : i32, i32
  }
  func.func @transform_2(%arg0: i32, %arg1: i32) -> (i32, i32) {
    %c0_i32 = arith.constant 0 : i32
    %c0_i32_0 = arith.constant 0 : i32
    return %arg0, %c0_i32 : i32, i32
  }
  func.func @transform_3(%arg0: i32, %arg1: i32) -> (i32, i32) {
    %c0_i32 = arith.constant 0 : i32
    return %arg0, %arg1 : i32, i32
  }
}

</mosaic_0001>

<bundles_post_ra>
// kernel: tpu_custom_call.1
= control target key start
LH: loop header
LB: loop body
LE: loop exit
PB: predicated region body
PF: predicated region fallthrough
CT: control target
= control target key end

     0   :  { %s117_s0 = inlined_call_operand.vmem [shape: f32[8,256], index: 0, kind: input, shape index: {}]   ;;  %s118_s1 = inlined_call_operand.vmem [shape: f32[8,1], index: 1, kind: input, shape index: {}]   ;;  %s119_s2 = inlined_call_operand.vmem [shape: f32[8,1], index: 2, kind: input, shape index: {}]   ;;  %s120_s3 = inlined_call_operand.hbm [shape: f32[8,256], index: 3, kind: output, shape index: {}]  }
   0x1   :  { %v17_v0 = vld [vmem:[%s118_s1] sm:$0xff] }
   0x2   :  { %8 = vsyncpa [#allocation3], 0  ;;  %v80_v1 = vmov 0   ;;  %v25_v2 = vld [vmem:[%s119_s2] sm:$0xff]  ;;  %v16_v5 = vld [vmem:[%s117_s0 + $0x8] sm:$0xff]  ;;  %s81_s1 = smov [#allocation2]  }
   0x3   :  { %53 = vset.pattern.permute.xlu0 %v80_v1  ;;  %v15_v4 = vld [vmem:[%s117_s0] sm:$0xff]  ;;  %s40_s20 = sshll.u32 %s81_s1, 4  ;;  %s42_s23 = sshll.u32 %s120_s3, 4  ;;  %s41_s20 = int_to_ptr.vmem [resolvable:$true] %s40_s20  ;;  %s43_s23 = int_to_ptr.hbm [resolvable:$true] %s42_s23 }
   0x4   :  { %20 = vperm.xlu0 %53, %v17_v0  }
   0xc   :  { %28 = vperm.xlu0 %53, %v25_v2  }
  0x76   :  { %v21_v3 = vpop.permute.xlu0 %20 }
  0x77   :  { %v23_v6 = vmul.f32 %v21_v3, %v15_v4  ;;  %v24_v7 = vmul.f32 %v21_v3, %v16_v5 }
  0x7e   :  { %v29_v8 = vpop.permute.xlu0 %28 }
  0x7f   :  { %v31_v9 = vadd.f32 %v29_v8, %v23_v6  ;;  %v32_v10 = vadd.f32 %v29_v8, %v24_v7 }
  0x81   :  { %33 = vst [vmem:[#allocation2] sm:$0xff] %v31_v9 }
  0x82   :  { %34 = vst [vmem:[#allocation2 + $0x8] sm:$0xff] %v32_v10 }
  0x83   :  { %45 = dma.vmem_to_hbm [thread:$0]  %s41_s20, 256, %s43_s23, [#allocation3]  }
  0x84   :  { %78 = dma.done.wait [#allocation3], 256  }
  0x85   :  { %79 = vsyncadd [#allocation3], 4294967040 }
  0x86   :  { %50 = vsyncpa [#allocation3], 1 }

</bundles_post_ra>
